<compile_context>
chip_gen: v5e
topology: v5e:2x2
jax: 0.10.0
libtpu: 0.0.40
codegen_flags: <defaults>
</compile_context>

<pallas_src>
import jax
import jax.numpy as jnp
from jax.experimental import pallas as pl
from jax.experimental.pallas import tpu as pltpu


def kbc_kernel(hs_ref, oa_ref, hvv_ref, w1_ref, w2_ref, w3_ref, b_ref, out_ref):
    # In-kernel GAP: sum over the spatial (HW) axis in f32; the 1/HW scale is
    # folded into the (C, 2) head weights, which also carry the fc(6->2) fold.
    s1 = jnp.sum(hs_ref[...], axis=2)    # (TB, C)
    s2 = jnp.sum(oa_ref[...], axis=2)    # (TB, C)
    s3 = jnp.sum(hvv_ref[...], axis=2)   # (TB, C)

    z = (jnp.dot(s1, w1_ref[...], preferred_element_type=jnp.float32)
         + jnp.dot(s2, w2_ref[...], preferred_element_type=jnp.float32)
         + jnp.dot(s3, w3_ref[...], preferred_element_type=jnp.float32)
         + b_ref[...])                   # (TB, 2)  == cat(out1,out2,out3) @ Wfc + bfc

    # Double softmax over dim=1 (nn.Softmax() then F.softmax(dim=1)),
    # elementwise 2-class form: p0 = 1/(1+exp(z1-z0)), p1 = 1-p0, applied twice.
    d = z[:, 1:2] - z[:, 0:1]                              # (TB, 1)
    p0 = pl.reciprocal(1.0 + jnp.exp(d), approx=False)     # first softmax, class 0
    d2 = 1.0 - 2.0 * p0                                    # = p1 - p0
    q0 = pl.reciprocal(1.0 + jnp.exp(d2), approx=False)    # second softmax, class 0
    q1 = 1.0 - q0
    out_ref[...] = jnp.concatenate([q0, q1], axis=1).astype(out_ref.dtype)


def _pick_tb(B, C, HW, itemsize=4, vmem_budget_bytes=32 * 1024 * 1024):
    """Batch-tile size: 3 activations x 2 pipeline buffers per tile must fit
    comfortably inside the (v7x-safe) scoped-VMEM budget."""
    per_row_bytes = 3 * 2 * C * HW * itemsize
    tb = max(1, (vmem_budget_bytes // 2) // max(per_row_bytes, 1))
    if tb >= B:
        return B                     # single tile: block == full batch dim
    return max(8, (tb // 8) * 8)     # multiple of 8 -> clean (8,128) tiling


def kbc_forward(OA, HS, HVV, params, tb=None):
    """OA, HS, HVV: (B, C, H, W) float32 (NCHW)."""
    B, C, H, W = OA.shape
    HW = H * W
    inv_hw = 1.0 / float(HW)

    # Fold fc(6->2) + all biases into three (C, 2) head weights and one bias.
    wfc = params["wfc"]                               # (6, 2) == Linear(6,2).weight.T
    w1f = (params["w1"] * inv_hw) @ wfc[0:2, :]       # head 1 (HS)
    w2f = (params["w2"] * inv_hw) @ wfc[2:4, :]       # head 2 (OA)
    w3f = (params["w3"] * inv_hw) @ wfc[4:6, :]       # head 3 (HVV)
    bf = (params["b1"] @ wfc[0:2, :] + params["b2"] @ wfc[2:4, :]
          + params["b3"] @ wfc[4:6, :] + params["bfc"]).reshape(1, 2)

    # NCHW -> (B, C, HW): contiguous merge of the last two dims (free).
    hs = HS.reshape(B, C, HW)
    oa = OA.reshape(B, C, HW)
    hvv = HVV.reshape(B, C, HW)

    if tb is None:
        tb = _pick_tb(B, C, HW, itemsize=hs.dtype.itemsize)
    tb = min(tb, B)
    grid = (pl.cdiv(B, tb),)

    act_spec = pl.BlockSpec((tb, C, HW), lambda i: (i, 0, 0))
    w_spec = pl.BlockSpec((C, 2), lambda i: (0, 0))
    b_spec = pl.BlockSpec((1, 2), lambda i: (0, 0))
    out_spec = pl.BlockSpec((tb, 2), lambda i: (i, 0))

    itemsize = hs.dtype.itemsize
    cost = pl.CostEstimate(
        flops=3 * B * C * HW + 12 * B * C + 8 * B,
        transcendentals=2 * B,
        bytes_accessed=3 * B * C * HW * itemsize + B * 2 * 4 + 3 * C * 2 * 4 + 8,
    )

    return pl.pallas_call(
        kbc_kernel,
        out_shape=jax.ShapeDtypeStruct((B, 2), jnp.float32),
        grid=grid,
        in_specs=[act_spec, act_spec, act_spec, w_spec, w_spec, w_spec, b_spec],
        out_specs=out_spec,
        compiler_params=pltpu.CompilerParams(
            dimension_semantics=("parallel",)),
        cost_estimate=cost,
    )(hs, oa, hvv, w1f, w2f, w3f, bf)


def kbc_reference(OA, HS, HVV, params):
    """Pure-JAX reference mirroring the PyTorch forward semantics."""
    def head(x, w, b):
        gap = jnp.mean(x, axis=(2, 3))          # (B, C) global average pool
        return gap @ w + b                      # (B, 2)

    out1 = head(HS, params["w1"], params["b1"])
    out2 = head(OA, params["w2"], params["b2"])
    out3 = head(HVV, params["w3"], params["b3"])
    out = jnp.concatenate([out1, out2, out3], axis=1)       # (B, 6)
    out = out @ params["wfc"] + params["bfc"]               # Linear(6, 2)
    out = jax.nn.softmax(out, axis=1)                       # nn.Softmax()
    out = jax.nn.softmax(out, axis=1)                       # F.softmax(dim=1)
    return out


if __name__ == "__main__":
    B, C, H, W = 16, 4, 16, 16

    key = jax.random.PRNGKey(0)
    ks = jax.random.split(key, 12)

    OA = jax.random.normal(ks[0], (B, C, H, W), dtype=jnp.float32)
    HS = jax.random.normal(ks[1], (B, C, H, W), dtype=jnp.float32)
    HVV = jax.random.normal(ks[2], (B, C, H, W), dtype=jnp.float32)

    params = {
        "w1": 0.5 * jax.random.normal(ks[3], (C, 2), dtype=jnp.float32),
        "b1": 0.1 * jax.random.normal(ks[4], (2,), dtype=jnp.float32),
        "w2": 0.5 * jax.random.normal(ks[5], (C, 2), dtype=jnp.float32),
        "b2": 0.1 * jax.random.normal(ks[6], (2,), dtype=jnp.float32),
        "w3": 0.5 * jax.random.normal(ks[7], (C, 2), dtype=jnp.float32),
        "b3": 0.1 * jax.random.normal(ks[8], (2,), dtype=jnp.float32),
        "wfc": 0.5 * jax.random.normal(ks[9], (6, 2), dtype=jnp.float32),
        "bfc": 0.1 * jax.random.normal(ks[10], (2,), dtype=jnp.float32),
    }

    # tb=8 exercises the multi-tile pipelined path (grid=(2,)) at demo size;
    # in production tb=None auto-sizes to the VMEM budget.
    out = kbc_forward(OA, HS, HVV, params, tb=8)
    out = jax.block_until_ready(out)

    ref = jax.block_until_ready(kbc_reference(OA, HS, HVV, params))
    assert out.shape == (B, 2)
    assert jnp.allclose(out, ref, atol=1e-5, rtol=1e-5), (out, ref)
    # rows of a double-softmax must sum to 1
    assert jnp.allclose(jnp.sum(out, axis=1), 1.0, atol=1e-5)

    print("KERNEL_OK")
</pallas_src>

<mosaic_0001>
module attributes {stable_mosaic.version = 11 : i64} {
  func.func @kbc_kernel(%arg0: i32, %arg1: memref<8x4x256xf32, #tpu.memory_space<vmem>>, %arg2: memref<8x4x256xf32, #tpu.memory_space<vmem>>, %arg3: memref<8x4x256xf32, #tpu.memory_space<vmem>>, %arg4: memref<4x2xf32, #tpu.memory_space<vmem>>, %arg5: memref<4x2xf32, #tpu.memory_space<vmem>>, %arg6: memref<4x2xf32, #tpu.memory_space<vmem>>, %arg7: memref<1x2xf32, #tpu.memory_space<vmem>>, %arg8: memref<8x2xf32, #tpu.memory_space<vmem>>) attributes {dimension_semantics = [#tpu.dimension_semantics<parallel>], iteration_bounds = array<i64: 2>, scalar_prefetch = 0 : i64, scratch_operands = 0 : i64, tpu.core_type = #tpu.core_type<tc>, window_params = [{transform_indices = @transform_0, window_bounds = array<i64: 8, 4, 256>}, {transform_indices = @transform_1, window_bounds = array<i64: 8, 4, 256>}, {transform_indices = @transform_2, window_bounds = array<i64: 8, 4, 256>}, {pipeline_mode = #tpu.pipeline_mode<synchronous>, transform_indices = @transform_3, window_bounds = array<i64: 4, 2>}, {pipeline_mode = #tpu.pipeline_mode<synchronous>, transform_indices = @transform_4, window_bounds = array<i64: 4, 2>}, {pipeline_mode = #tpu.pipeline_mode<synchronous>, transform_indices = @transform_5, window_bounds = array<i64: 4, 2>}, {pipeline_mode = #tpu.pipeline_mode<synchronous>, transform_indices = @transform_6, window_bounds = array<i64: 1, 2>}, {transform_indices = @transform_7, window_bounds = array<i64: 8, 2>}]} {
    %c0 = arith.constant 0 : index
    %c0_0 = arith.constant 0 : index
    %c0_1 = arith.constant 0 : index
    %0 = vector.load %arg1[%c0, %c0_0, %c0_1] : memref<8x4x256xf32, #tpu.memory_space<vmem>>, vector<8x4x256xf32>
    %cst = arith.constant dense<0.000000e+00> : vector<8x4xf32>
    %1 = vector.multi_reduction <add>, %0, %cst [2] : vector<8x4x256xf32> to vector<8x4xf32>
    %c0_2 = arith.constant 0 : index
    %c0_3 = arith.constant 0 : index
    %c0_4 = arith.constant 0 : index
    %2 = vector.load %arg2[%c0_2, %c0_3, %c0_4] : memref<8x4x256xf32, #tpu.memory_space<vmem>>, vector<8x4x256xf32>
    %cst_5 = arith.constant dense<0.000000e+00> : vector<8x4xf32>
    %3 = vector.multi_reduction <add>, %2, %cst_5 [2] : vector<8x4x256xf32> to vector<8x4xf32>
    %c0_6 = arith.constant 0 : index
    %c0_7 = arith.constant 0 : index
    %c0_8 = arith.constant 0 : index
    %4 = vector.load %arg3[%c0_6, %c0_7, %c0_8] : memref<8x4x256xf32, #tpu.memory_space<vmem>>, vector<8x4x256xf32>
    %cst_9 = arith.constant dense<0.000000e+00> : vector<8x4xf32>
    %5 = vector.multi_reduction <add>, %4, %cst_9 [2] : vector<8x4x256xf32> to vector<8x4xf32>
    %c0_10 = arith.constant 0 : index
    %c0_11 = arith.constant 0 : index
    %6 = vector.load %arg4[%c0_10, %c0_11] : memref<4x2xf32, #tpu.memory_space<vmem>>, vector<4x2xf32>
    %cst_12 = arith.constant dense<0.000000e+00> : vector<8x2xf32>
    %7 = tpu.matmul %1, %6, %cst_12 {dimension_numbers = #tpu.dot_dimension_numbers<[1], [0], [0], [1], [0, 0, 1, 1], [], []>} : vector<8x4xf32>, vector<4x2xf32>, vector<8x2xf32> -> vector<8x2xf32>
    %c0_13 = arith.constant 0 : index
    %c0_14 = arith.constant 0 : index
    %8 = vector.load %arg5[%c0_13, %c0_14] : memref<4x2xf32, #tpu.memory_space<vmem>>, vector<4x2xf32>
    %cst_15 = arith.constant dense<0.000000e+00> : vector<8x2xf32>
    %9 = tpu.matmul %3, %8, %cst_15 {dimension_numbers = #tpu.dot_dimension_numbers<[1], [0], [0], [1], [0, 0, 1, 1], [], []>} : vector<8x4xf32>, vector<4x2xf32>, vector<8x2xf32> -> vector<8x2xf32>
    %10 = arith.addf %7, %9 : vector<8x2xf32>
    %c0_16 = arith.constant 0 : index
    %c0_17 = arith.constant 0 : index
    %11 = vector.load %arg6[%c0_16, %c0_17] : memref<4x2xf32, #tpu.memory_space<vmem>>, vector<4x2xf32>
    %cst_18 = arith.constant dense<0.000000e+00> : vector<8x2xf32>
    %12 = tpu.matmul %5, %11, %cst_18 {dimension_numbers = #tpu.dot_dimension_numbers<[1], [0], [0], [1], [0, 0, 1, 1], [], []>} : vector<8x4xf32>, vector<4x2xf32>, vector<8x2xf32> -> vector<8x2xf32>
    %13 = arith.addf %10, %12 : vector<8x2xf32>
    %c0_19 = arith.constant 0 : index
    %c0_20 = arith.constant 0 : index
    %14 = vector.load %arg7[%c0_19, %c0_20] : memref<1x2xf32, #tpu.memory_space<vmem>>, vector<1x2xf32>
    %15 = vector.broadcast %14 : vector<1x2xf32> to vector<8x2xf32>
    %16 = arith.addf %13, %15 : vector<8x2xf32>
    %17 = vector.extract_strided_slice %16 {offsets = [0, 1], sizes = [8, 1], strides = [1, 1]} : vector<8x2xf32> to vector<8x1xf32>
    %18 = vector.extract_strided_slice %16 {offsets = [0, 0], sizes = [8, 1], strides = [1, 1]} : vector<8x2xf32> to vector<8x1xf32>
    %19 = arith.subf %17, %18 : vector<8x1xf32>
    %20 = math.exp %19 : vector<8x1xf32>
    %cst_21 = arith.constant 1.000000e+00 : f32
    %21 = vector.broadcast %cst_21 : f32 to vector<8x1xf32>
    %22 = arith.addf %21, %20 : vector<8x1xf32>
    %23 = tpu.reciprocal %22 : vector<8x1xf32> -> vector<8x1xf32>
    %cst_22 = arith.constant 2.000000e+00 : f32
    %24 = vector.broadcast %cst_22 : f32 to vector<8x1xf32>
    %25 = arith.mulf %24, %23 : vector<8x1xf32>
    %cst_23 = arith.constant 1.000000e+00 : f32
    %26 = vector.broadcast %cst_23 : f32 to vector<8x1xf32>
    %27 = arith.subf %26, %25 : vector<8x1xf32>
    %28 = math.exp %27 : vector<8x1xf32>
    %cst_24 = arith.constant 1.000000e+00 : f32
    %29 = vector.broadcast %cst_24 : f32 to vector<8x1xf32>
    %30 = arith.addf %29, %28 : vector<8x1xf32>
    %31 = tpu.reciprocal %30 : vector<8x1xf32> -> vector<8x1xf32>
    %cst_25 = arith.constant 1.000000e+00 : f32
    %32 = vector.broadcast %cst_25 : f32 to vector<8x1xf32>
    %33 = arith.subf %32, %31 : vector<8x1xf32>
    %34 = tpu.concatenate %31, %33 in 1 : vector<8x1xf32>, vector<8x1xf32> -> vector<8x2xf32>
    %c0_26 = arith.constant 0 : index
    %c0_27 = arith.constant 0 : index
    %35 = vector.load %arg8[%c0_26, %c0_27] : memref<8x2xf32, #tpu.memory_space<vmem>>, vector<8x2xf32>
    tpu.vector_store %arg8[%c0_26, %c0_27], %34 {strides = array<i32>} : memref<8x2xf32, #tpu.memory_space<vmem>>, vector<8x2xf32>,
    return
  }
  func.func @transform_0(%arg0: i32) -> (i32, i32, i32) {
    %c0_i32 = arith.constant 0 : i32
    %c0_i32_0 = arith.constant 0 : i32
    %c0_i32_1 = arith.constant 0 : i32
    return %arg0, %c0_i32, %c0_i32_0 : i32, i32, i32
  }
  func.func @transform_1(%arg0: i32) -> (i32, i32, i32) {
    %c0_i32 = arith.constant 0 : i32
    %c0_i32_0 = arith.constant 0 : i32
    %c0_i32_1 = arith.constant 0 : i32
    return %arg0, %c0_i32, %c0_i32_0 : i32, i32, i32
  }
  func.func @transform_2(%arg0: i32) -> (i32, i32, i32) {
    %c0_i32 = arith.constant 0 : i32
    %c0_i32_0 = arith.constant 0 : i32
    %c0_i32_1 = arith.constant 0 : i32
    return %arg0, %c0_i32, %c0_i32_0 : i32, i32, i32
  }
  func.func @transform_3(%arg0: i32) -> (i32, i32) {
    %c0_i32 = arith.constant 0 : i32
    %c0_i32_0 = arith.constant 0 : i32
    %c0_i32_1 = arith.constant 0 : i32
    return %c0_i32, %c0_i32_0 : i32, i32
  }
  func.func @transform_4(%arg0: i32) -> (i32, i32) {
    %c0_i32 = arith.constant 0 : i32
    %c0_i32_0 = arith.constant 0 : i32
    %c0_i32_1 = arith.constant 0 : i32
    return %c0_i32, %c0_i32_0 : i32, i32
  }
  func.func @transform_5(%arg0: i32) -> (i32, i32) {
    %c0_i32 = arith.constant 0 : i32
    %c0_i32_0 = arith.constant 0 : i32
    %c0_i32_1 = arith.constant 0 : i32
    return %c0_i32, %c0_i32_0 : i32, i32
  }
  func.func @transform_6(%arg0: i32) -> (i32, i32) {
    %c0_i32 = arith.constant 0 : i32
    %c0_i32_0 = arith.constant 0 : i32
    %c0_i32_1 = arith.constant 0 : i32
    return %c0_i32, %c0_i32_0 : i32, i32
  }
  func.func @transform_7(%arg0: i32) -> (i32, i32) {
    %c0_i32 = arith.constant 0 : i32
    %c0_i32_0 = arith.constant 0 : i32
    return %arg0, %c0_i32 : i32, i32
  }
}

</mosaic_0001>

<bundles_post_ra>
// kernel: tpu_custom_call.1
= control target key start
LH: loop header
LB: loop body
LE: loop exit
PB: predicated region body
PF: predicated region fallthrough
CT: control target
= control target key end

     0   :  { %s1606_s0 = inlined_call_operand.hbm [shape: f32[16,4,256], index: 0, kind: input, shape index: {}]   ;;  %s1607_s1 = inlined_call_operand.hbm [shape: f32[16,4,256], index: 1, kind: input, shape index: {}]   ;;  %s1608_s2 = inlined_call_operand.hbm [shape: f32[16,4,256], index: 2, kind: input, shape index: {}]   ;;  %s1609_s3 = inlined_call_operand.vmem [shape: f32[4,2], index: 3, kind: input, shape index: {}]   ;;  %s1610_s4 = inlined_call_operand.vmem [shape: f32[4,2], index: 4, kind: input, shape index: {}]   ;;  %s1611_s5 = inlined_call_operand.vmem [shape: f32[4,2], index: 5, kind: input, shape index: {}]   ;;  %s1612_s6 = inlined_call_operand.vmem [shape: f32[1,2], index: 6, kind: input, shape index: {}]   ;;  %s1613_s7 = inlined_call_operand.vmem [shape: f32[16,2], index: 7, kind: output, shape index: {}]  }
   0x1   :  { %1614 = sst [smem:[#allocation10_spill]] %s1606_s0 }
   0x2   :  { %1615 = sst [smem:[#allocation11_spill]] %s1607_s1 }
   0x3   :  { %12 = vsyncpa [#allocation3], 0 }
   0x4   :  { %14 = vsyncpa [#allocation3 + $0x1], 0 }
   0x5   :  { %15 = vsyncpa [#allocation5], 0 }
   0x6   :  { %17 = vsyncpa [#allocation5 + $0x1], 0  ;;  %s1275_s24 = smov 0   ;;  %s1277_s25 = smov 0  }
   0x7   :  { %s1279_s26 = smov 0   ;;  %s1281_s27 = smov 0  }
   0x8 LB: > { %s1294_s28 = sadd.s32 4294967295, %s1229_s27   ;;  %s1297_s29 = sadd.s32 1, %s1229_s27   ;;  %s1229_s27 = sphi %s1281_s27, %s1626_s27   ;;  %s1225_s26 = sphi %s1279_s26, %s1625_s26   ;;  %s1221_s25 = sphi %s1277_s25, %s1624_s25   ;;  %s1217_s24 = sphi %s1275_s24, %s1623_s24  }
   0x9   : > { %s27_s30 = ssub.s32 %s1229_s27, %s1297_s29  ;;  %s30_s8 = sadd.s32 1, %s1225_s26 }
   0xa   : > { %p28_p0 = scmp.eq.s32.totalorder %s27_s30, 0  ;;  %p37_p1 = scmp.ne.s32.totalorder %s1225_s26, %s1221_s25 }
   0xb   : > { %p38_p2 = scmp.eq.s32.totalorder %s1229_s27, 0  ;;  %p43_p3 = scmp.ne.s32.totalorder %s1221_s25, %s1217_s24 }
   0xc   : > { %s1307_s9 = scalar_select %p28_p0, %s1225_s26, %s30_s8  }
   0xd   : > { %p39_p4 = por %p38_p2, %p37_p1  ;;  %p44_p5 = scmp.eq.s32.totalorder %s1294_s28, 0 }
   0xe   : > { %1616 = sst [smem:[#allocation9_spill]] %s1307_s9  ;;  %p1055_p6 = scmp.lt.s32.totalorder %s1229_s27, 2 }
   0xf   : > { %p1311_p7 = por %p44_p5, %p43_p3  ;;  %s241_s11 = sand.u32 1, %s1225_s26  }
  0x10   : > { %s1318_s12 = sshll.u32 %s241_s11, 6  ;;  %s1321_s13 = sshll.u32 %s1229_s27, 6 }
  0x11   : > { %p1323_p8 = pnand %p1055_p6, %p39_p4  ;;  %s264_s15 = sand.u32 1, %s1229_s27  }
  0x12   : > { %s1619_s1 = sld [smem:[#allocation11_spill]]  ;;  %s268_s20 = scalar_lea.vmem [#allocation4], %s1318_s12 }
  0x13   : > { %s277_s21 = sshll.u32 %s268_s20, 4  ;;  %s1333_s22 = scalar_lea.sflag [#allocation5], %s264_s15  ;;  %s278_s21 = int_to_ptr.vmem [resolvable:$true] %s277_s21 }
  0x14   : > { %p1105_p10 = pneg %p1323_p8 }
  0x18   : > { %s274_s18 = scalar_lea.hbm %s1619_s1, %s1321_s13  ;;  %s1108_s16 = scalar_lea.hbm %s1619_s1, 128 }
  0x19   : > { %s275_s19 = sshll.u32 %s274_s18, 4  ;;  %s276_s19 = int_to_ptr.hbm [resolvable:$true] %s275_s19 }
  0x1a   : > { %s1101_s23 = sshra.s32 %s276_s19, 4  ;;  %s1102_s23 = int_to_ptr.hbm [resolvable:$true] %s1101_s23 }
  0x1b   : > { %s1103_s24 = scalar_lea.hbm %s1102_s23, 64  ;;  %p1109_p13 = scmp.lt.s32.totalorder %s1102_s23, %s1619_s1 }
  0x1c   : > { %p1104_p9 = scmp.ne.s32.totalorder %s1102_s23, %s1103_s24  ;;  %p1110_p0 = scmp.lt.s32.totalorder %s1108_s16, %s1103_s24 }
  0x1e   : > { %p1106_p11 = pnand %p1105_p10, %p1104_p9  ;;  %p1111_p1 = por %p1110_p0, %p1109_p13 }
  0x20   : > { %p1107_p12 = pneg %p1106_p11 }
  0x22   : > { %p1112_p2 = pnand %p1111_p1, %p1107_p12 }
  0x24   : > { %1115 = shalt.err (!%p1112_p2)
}
  0x25   : > { %s1231_s15 = smov 128   ;;  %s1232_s20 = smov 8  }
  0x26   : > { %1051 = dma.hbm_to_vmem [thread:$0]  (!%p1323_p8), %s276_s19, 1024, %s278_s21, %s1333_s22, %s1231_s15, %s1231_s15, %s1232_s20  }
  0x27   : > { %p1020_p3 = scmp.ge.s32.totalorder %s1229_s27, 1  ;;  %p308_p4 = scmp.lt.s32.totalorder %s1229_s27, 3 }
  0x28   : > { %s1621_s0 = sld [smem:[#allocation10_spill]]  ;;  %s245_s17 = scalar_lea.vmem [#allocation2], %s1318_s12 }
  0x29   : > { %p1354_p5 = pnand %p1020_p3, %p308_p4  ;;  %s254_s18 = sshll.u32 %s245_s17, 4  ;;  %s255_s18 = int_to_ptr.vmem [resolvable:$true] %s254_s18 }
  0x2a   : > { %s242_s1 = scalar_lea.sflag [#allocation3], %s241_s11 }
  0x2e   : > { %s251_s8 = scalar_lea.hbm %s1621_s0, %s1321_s13  ;;  %s1138_s24 = scalar_lea.hbm %s1621_s0, 128 }
  0x2f   : > { %s252_s16 = sshll.u32 %s251_s8, 4  ;;  %s253_s16 = int_to_ptr.hbm [resolvable:$true] %s252_s16 }
  0x30   : > { %s1131_s9 = sshra.s32 %s253_s16, 4  ;;  %s1132_s9 = int_to_ptr.hbm [resolvable:$true] %s1131_s9 }
  0x31   : > { %s1133_s19 = scalar_lea.hbm %s1132_s9, 64  ;;  %p1139_p12 = scmp.lt.s32.totalorder %s1132_s9, %s1621_s0 }
  0x32   : > { %p1134_p6 = scmp.ne.s32.totalorder %s1132_s9, %s1133_s19  ;;  %p1140_p13 = scmp.lt.s32.totalorder %s1138_s24, %s1133_s19 }
  0x34   : > { %p1136_p9 = pnand %p1134_p6, %p1105_p10  ;;  %p1141_p0 = por %p1140_p13, %p1139_p12 }
  0x36   : > { %p1137_p11 = pneg %p1136_p9 }
  0x38   : > { %p1142_p1 = pnand %p1141_p0, %p1137_p11 }
  0x3a   : > { %1145 = shalt.err (!%p1142_p1)
}
  0x3b   : > { %1048 = dma.hbm_to_vmem [thread:$0]  (!%p1323_p8), %s253_s16, 1024, %s255_s18, %s242_s1, %s1231_s15, %s1231_s15, %s1232_s20  }
  0x3c   : > { %s297_s27 = scalar_lea.hbm %s1608_s2, %s1321_s13  ;;  %s291_s30 = scalar_lea.vmem [#allocation6], %s1318_s12 }
  0x3d   : > { %s298_s21 = sshll.u32 %s297_s27, 4  ;;  %s300_s9 = sshll.u32 %s291_s30, 4  ;;  %s299_s21 = int_to_ptr.hbm [resolvable:$true] %s298_s21  ;;  %s301_s9 = int_to_ptr.vmem [resolvable:$true] %s300_s9 }
  0x3e   : > { %s1161_s19 = sshra.s32 %s299_s21, 4  ;;  %s1168_s1 = scalar_lea.hbm %s1608_s2, 128  ;;  %s1162_s19 = int_to_ptr.hbm [resolvable:$true] %s1161_s19 }
  0x3f   : > { %s1163_s24 = scalar_lea.hbm %s1162_s19, 64  ;;  %p1169_p6 = scmp.lt.s32.totalorder %s1162_s19, %s1608_s2 }
  0x40   : > { %p1164_p2 = scmp.ne.s32.totalorder %s1162_s19, %s1163_s24  ;;  %p1170_p9 = scmp.lt.s32.totalorder %s1168_s1, %s1163_s24 }
  0x42   : > { %p1166_p3 = pnand %p1164_p2, %p1105_p10  ;;  %p1171_p11 = por %p1170_p9, %p1169_p6 }
  0x44   : > { %p1167_p4 = pneg %p1166_p3 }
  0x46   : > { %p1172_p12 = pnand %p1171_p11, %p1167_p4 }
  0x48   : > { %1175 = shalt.err (!%p1172_p12)
}
  0x49   : > { %1054 = dma.hbm_to_vmem [thread:$0]  (!%p1323_p8), %s299_s21, 1024, %s301_s9, %s1333_s22, %s1231_s15, %s1231_s15, %s1232_s20  }
  0x4a   : > { %312 = sbr.rel (%p1354_p5) target bundleno = 717 (0x2cd), region = 48  ;;  %s314_s0 = sand.u32 (!%p1354_p5), 1, %s1221_s25  }
  0x4b   : > { %s1402_s12 = sshll.u32 (!%p1354_p5), %s314_s0, 6  ;;  %s315_s13 = scalar_lea.sflag (!%p1354_p5), [#allocation3], %s314_s0 }
  0x4c   : > { %s318_s11 = scalar_lea.vmem (!%p1354_p5), [#allocation2], %s1402_s12 }
  0x4f   : > { %1208 = dma.done.wait (%p1311_p7), %s315_s13, 1024  }
  0x50   : > { %1210 = vsyncadd (%p1311_p7), %s315_s13, 4294966272  ;;  %s324_s14 = sand.u32 1, %s1294_s28   ;;  %s1411_s15 = scalar_lea.vmem [#allocation4], %s1402_s12 }
  0x51   : > { %s325_s22 = scalar_lea.sflag [#allocation5], %s324_s14 }
  0x52   : > { %1212 = dma.done.wait (%p1311_p7), %s325_s22, 2048  }
  0x53   : > { %1214 = vsyncadd (%p1311_p7), %s325_s22, 4294965248  ;;  %v388_v0 = vld [vmem:[%s318_s11 + $0x10] sm:$0xff]  ;;  %v389_v1 = vld [vmem:[%s318_s11 + $0x18] sm:$0xff]  ;;  %vm445_vm0 = vcmask 1043456   ;;  %s1448_s10 = scalar_lea.vmem [#allocation6], %s1402_s12  ;;  %vm704_vm1 = vcmask 1041409  }
  0x54   : > { %410 = vst [vmem:[#allocation1 + $0x20] ss:$2 sm:$0xff] %v388_v0  ;;  %v386_v2 = vld [vmem:[%s318_s11] sm:$0xff]  ;;  %v387_v3 = vld [vmem:[%s318_s11 + $0x8] sm:$0xff]  ;;  %v392_v4 = vld [vmem:[%s318_s11 + $0x30] sm:$0xff]  ;;  %vm706_vm2 = vcmask 1042434  }
  0x55   : > { %414 = vst [vmem:[#allocation1 + $0x30] ss:$2 sm:$0xff] %v389_v1  ;;  %v393_v5 = vld [vmem:[%s318_s11 + $0x38] sm:$0xff]  ;;  %v390_v10 = vld [vmem:[%s318_s11 + $0x20] sm:$0xff]  ;;  %v391_v14 = vld [vmem:[%s318_s11 + $0x28] sm:$0xff]  ;;  %vm708_vm3 = vcmask 1043459  }
  0x56   : > { %402 = vst [vmem:[#allocation1] ss:$2 sm:$0xff] %v386_v2  ;;  %v488_v15 = vld [vmem:[%s1411_s15 + $0x10] sm:$0xff]  ;;  %v489_v25 = vld [vmem:[%s1411_s15 + $0x18] sm:$0xff]  ;;  %v486_v32 = vld [vmem:[%s1411_s15] sm:$0xff]  ;;  %vm710_vm4 = vcmask 1044484  }
  0x57   : > { %406 = vst [vmem:[#allocation1 + $0x10] ss:$2 sm:$0xff] %v387_v3  ;;  %v487_v35 = vld [vmem:[%s1411_s15 + $0x8] sm:$0xff]  ;;  %v492_v40 = vld [vmem:[%s1411_s15 + $0x30] sm:$0xff]  ;;  %v493_v45 = vld [vmem:[%s1411_s15 + $0x38] sm:$0xff]  ;;  %vm712_vm5 = vcmask 1045509  }
  0x58   : > { %v490_v50 = vld [vmem:[%s1411_s15 + $0x20] sm:$0xff]  ;;  %v491_v53 = vld [vmem:[%s1411_s15 + $0x28] sm:$0xff]  ;;  %v587_v58 = vld [vmem:[%s1448_s10 + $0x10] sm:$0xff]  ;;  %vm714_vm6 = vcmask 1046534   ;;  %vm716_vm7 = vcmask 1047559   ;;  %vm718_vm8 = vcmask 31744  }
  0x59   : > { %v588_v63 = vld [vmem:[%s1448_s10 + $0x18] sm:$0xff]  ;;  %s1233_s24 = smov 1   ;;  %s1234_s8 = smov 127  }
  0x5a   : > { %p382_p7 = scmp.lt.s32.totalorder %s1294_s28, 1 }
  0x5b   : > { %v411_v6 = vld.sshfl [vmem:[#allocation1 + $0x20] sm:$0xff pattern:$0x75316420]  ;;  %v412_v7 = vld.sshfl [vmem:[#allocation1 + $0x28] sm:$0xff pattern:$0x75316420] }
  0x5c   : > { %v456_v8 = vsel %vm445_vm0, %v411_v6, 0.0  ;;  %v457_v9 = vsel %vm445_vm0, %v412_v7, 0.0  ;;  %423 = vst [vmem:[#allocation1 + $0x20] ss:$2 sm:$0xff] %v392_v4  ;;  %v585_v4 = vld [vmem:[%s1448_s10] sm:$0xff]  ;;  %s1628_s28 = smov (!%p382_p7, %s1294_s28), 1 }
  0x5d   : > { %v458_v11 = vadd.f32 %v457_v9, %v456_v8  ;;  %v415_v12 = vld.sshfl [vmem:[#allocation1 + $0x30] sm:$0xff pattern:$0x75316420]  ;;  %v416_v13 = vld.sshfl [vmem:[#allocation1 + $0x38] sm:$0xff pattern:$0x75316420] }
  0x5e   : > { %426 = vst [vmem:[#allocation1 + $0x30] ss:$2 sm:$0xff] %v393_v5  ;;  %v403_v16 = vld.sshfl [vmem:[#allocation1] sm:$0xff pattern:$0x75316420]  ;;  %v461_v18 = vsel %vm445_vm0, %v415_v12, 0.0 }
  0x5f   : > { %459 = vadd.xlane.f32.xlu1 %v458_v11  ;;  %v404_v17 = vld.sshfl [vmem:[#allocation1 + $0x8] sm:$0xff pattern:$0x75316420]  ;;  %v462_v19 = vsel %vm445_vm0, %v416_v13, 0.0  ;;  %v446_v20 = vsel %vm445_vm0, %v403_v16, 0.0  ;;  %v586_v9 = vld [vmem:[%s1448_s10 + $0x8] sm:$0xff] }
  0x60   : > { %v447_v21 = vsel %vm445_vm0, %v404_v17, 0.0  ;;  %417 = vst [vmem:[#allocation1] ss:$2 sm:$0xff] %v390_v10  ;;  %v407_v23 = vld.sshfl [vmem:[#allocation1 + $0x10] sm:$0xff pattern:$0x75316420]  ;;  %v463_v30 = vadd.f32 %v462_v19, %v461_v18 }
  0x61   : > { %v448_v22 = vadd.f32 %v447_v21, %v446_v20  ;;  %v408_v24 = vld.sshfl [vmem:[#allocation1 + $0x18] sm:$0xff pattern:$0x75316420]  ;;  %v451_v26 = vsel %vm445_vm0, %v407_v23, 0.0  ;;  %v589_v21 = vld [vmem:[%s1448_s10 + $0x20] sm:$0xff]  ;;  %s1024_s1 = sshll.u32 %s1628_s28, 3 }
  0x62   : > { %v452_v27 = vsel %vm445_vm0, %v408_v24, 0.0  ;;  %420 = vst [vmem:[#allocation1 + $0x10] ss:$2 sm:$0xff] %v391_v14  ;;  %v591_v12 = vld [vmem:[%s1448_s10 + $0x30] sm:$0xff]  ;;  %s385_s0 = scalar_lea.vmem %s1613_s7, %s1024_s1 }
  0x63   : > { %v1427_v28 = vld.sshfl [vmem:[#allocation1 + $0x20] sm:$0xff pattern:$0x75316420]  ;;  %v1429_v29 = vld.sshfl [vmem:[#allocation1 + $0x28] sm:$0xff pattern:$0x75316420]  ;;  %449 = vadd.xlane.f32.xlu2 %v448_v22  ;;  %v453_v31 = vadd.f32 %v452_v27, %v451_v26 }
  0x64   : > { %510 = vst [vmem:[#allocation1 + $0x20] ss:$2 sm:$0xff] %v488_v15  ;;  %v592_v22 = vld [vmem:[%s1448_s10 + $0x38] sm:$0xff]  ;;  %v590_v27 = vld [vmem:[%s1448_s10 + $0x28] sm:$0xff] }
  0x65   : > { %v1432_v33 = vld.sshfl [vmem:[#allocation1 + $0x30] sm:$0xff pattern:$0x75316420]  ;;  %v1434_v34 = vld.sshfl [vmem:[#allocation1 + $0x38] sm:$0xff pattern:$0x75316420]  ;;  %454 = vadd.xlane.f32.xlu0 %v453_v31 }
  0x66   : > { %514 = vst [vmem:[#allocation1 + $0x30] ss:$2 sm:$0xff] %v489_v25 }
  0x67   : > { %464 = vadd.xlane.f32.xlu1 %v463_v30  ;;  %v418_v36 = vld.sshfl [vmem:[#allocation1] sm:$0xff pattern:$0x75316420]  ;;  %v419_v37 = vld.sshfl [vmem:[#allocation1 + $0x8] sm:$0xff pattern:$0x75316420] }
  0x68   : > { %v466_v38 = vsel %vm445_vm0, %v418_v36, 0.0  ;;  %v467_v39 = vsel %vm445_vm0, %v419_v37, 0.0  ;;  %502 = vst [vmem:[#allocation1] ss:$2 sm:$0xff] %v486_v32 }
  0x69   : > { %v421_v41 = vld.sshfl [vmem:[#allocation1 + $0x10] sm:$0xff pattern:$0x75316420]  ;;  %v422_v42 = vld.sshfl [vmem:[#allocation1 + $0x18] sm:$0xff pattern:$0x75316420]  ;;  %v468_v46 = vadd.f32 %v467_v39, %v466_v38 }
  0x6a   : > { %506 = vst [vmem:[#allocation1 + $0x10] ss:$2 sm:$0xff] %v487_v35  ;;  %v471_v43 = vsel %vm445_vm0, %v421_v41, 0.0  ;;  %v472_v44 = vsel %vm445_vm0, %v422_v42, 0.0 }
  0x6b   : > { %v473_v47 = vadd.f32 %v472_v44, %v471_v43  ;;  %v511_v48 = vld.sshfl [vmem:[#allocation1 + $0x20] sm:$0xff pattern:$0x75316420]  ;;  %v512_v49 = vld.sshfl [vmem:[#allocation1 + $0x28] sm:$0xff pattern:$0x75316420] }
  0x6c   : > { %523 = vst [vmem:[#allocation1 + $0x20] ss:$2 sm:$0xff] %v492_v40  ;;  %v555_v7 = vsel %vm445_vm0, %v511_v48, 0.0  ;;  %v556_v8 = vsel %vm445_vm0, %v512_v49, 0.0 }
  0x6d   : > { %474 = vadd.xlane.f32.xlu0 %v473_v47  ;;  %v515_v51 = vld.sshfl [vmem:[#allocation1 + $0x30] sm:$0xff pattern:$0x75316420]  ;;  %v516_v52 = vld.sshfl [vmem:[#allocation1 + $0x38] sm:$0xff pattern:$0x75316420]  ;;  %v557_v13 = vadd.f32 %v556_v8, %v555_v7 }
  0x6e   : > { %526 = vst [vmem:[#allocation1 + $0x30] ss:$2 sm:$0xff] %v493_v45  ;;  %v560_v25 = vsel %vm445_vm0, %v515_v51, 0.0  ;;  %v561_v26 = vsel %vm445_vm0, %v516_v52, 0.0 }
  0x6f   : > { %469 = vadd.xlane.f32.xlu1 %v468_v46  ;;  %v503_v54 = vld.sshfl [vmem:[#allocation1] sm:$0xff pattern:$0x75316420]  ;;  %v504_v55 = vld.sshfl [vmem:[#allocation1 + $0x8] sm:$0xff pattern:$0x75316420]  ;;  %v562_v38 = vadd.f32 %v561_v26, %v560_v25 }
  0x70   : > { %517 = vst [vmem:[#allocation1] ss:$2 sm:$0xff] %v490_v50  ;;  %v545_v56 = vsel %vm445_vm0, %v503_v54, 0.0  ;;  %v546_v57 = vsel %vm445_vm0, %v504_v55, 0.0 }
  0x71   : > { %v507_v59 = vld.sshfl [vmem:[#allocation1 + $0x10] sm:$0xff pattern:$0x75316420]  ;;  %v508_v60 = vld.sshfl [vmem:[#allocation1 + $0x18] sm:$0xff pattern:$0x75316420]  ;;  %v547_v3 = vadd.f32 %v546_v57, %v545_v56 }
  0x72   : > { %520 = vst [vmem:[#allocation1 + $0x10] ss:$2 sm:$0xff] %v491_v53  ;;  %v550_v61 = vsel %vm445_vm0, %v507_v59, 0.0  ;;  %v551_v62 = vsel %vm445_vm0, %v508_v60, 0.0  ;;  %v476_v56 = vsel %vm445_vm0, %v1427_v28, 0.0  ;;  %v477_v57 = vsel %vm445_vm0, %v1429_v29, 0.0 }
  0x73   : > { %v552_v0 = vadd.f32 %v551_v62, %v550_v61  ;;  %v1454_v1 = vld.sshfl [vmem:[#allocation1 + $0x20] sm:$0xff pattern:$0x75316420]  ;;  %v1456_v2 = vld.sshfl [vmem:[#allocation1 + $0x28] sm:$0xff pattern:$0x75316420]  ;;  %v478_v61 = vadd.f32 %v477_v57, %v476_v56 }
  0x74   : > { %609 = vst [vmem:[#allocation1 + $0x20] ss:$2 sm:$0xff] %v587_v58  ;;  %v481_v59 = vsel %vm445_vm0, %v1432_v33, 0.0  ;;  %v482_v60 = vsel %vm445_vm0, %v1434_v34, 0.0 }
  0x75   : > { %553 = vadd.xlane.f32.xlu2 %v552_v0  ;;  %v1459_v5 = vld.sshfl [vmem:[#allocation1 + $0x30] sm:$0xff pattern:$0x75316420]  ;;  %v1461_v6 = vld.sshfl [vmem:[#allocation1 + $0x38] sm:$0xff pattern:$0x75316420] }
  0x76   : > { %613 = vst [vmem:[#allocation1 + $0x30] ss:$2 sm:$0xff] %v588_v63 }
  0x77   : > { %v518_v10 = vld.sshfl [vmem:[#allocation1] sm:$0xff pattern:$0x75316420]  ;;  %v519_v11 = vld.sshfl [vmem:[#allocation1 + $0x8] sm:$0xff pattern:$0x75316420]  ;;  %548 = vadd.xlane.f32.xlu1 %v547_v3 }
  0x78   : > { %601 = vst [vmem:[#allocation1] ss:$2 sm:$0xff] %v585_v4  ;;  %v565_v45 = vsel %vm445_vm0, %v518_v10, 0.0  ;;  %v566_v46 = vsel %vm445_vm0, %v519_v11, 0.0  ;;  %v483_v4 = vadd.f32 %v482_v60, %v481_v59 }
  0x79   : > { %v521_v14 = vld.sshfl [vmem:[#allocation1 + $0x10] sm:$0xff pattern:$0x75316420]  ;;  %v522_v15 = vld.sshfl [vmem:[#allocation1 + $0x18] sm:$0xff pattern:$0x75316420]  ;;  %v567_v50 = vadd.f32 %v566_v46, %v565_v45 }
  0x7a   : > { %v570_v16 = vsel %vm445_vm0, %v521_v14, 0.0  ;;  %v571_v17 = vsel %vm445_vm0, %v522_v15, 0.0  ;;  %605 = vst [vmem:[#allocation1 + $0x10] ss:$2 sm:$0xff] %v586_v9  ;;  %v581_v14 = vsel %vm445_vm0, %v1461_v6, 0.0 }
  0x7b   : > { %v572_v18 = vadd.f32 %v571_v17, %v570_v16  ;;  %v610_v19 = vld.sshfl [vmem:[#allocation1 + $0x20] sm:$0xff pattern:$0x75316420]  ;;  %v611_v20 = vld.sshfl [vmem:[#allocation1 + $0x28] sm:$0xff pattern:$0x75316420] }
  0x7c   : > { %622 = vst [vmem:[#allocation1 + $0x20] ss:$2 sm:$0xff] %v591_v12  ;;  %v654_v36 = vsel %vm445_vm0, %v610_v19, 0.0  ;;  %v655_v37 = vsel %vm445_vm0, %v611_v20, 0.0  ;;  %v575_v17 = vsel %vm445_vm0, %v1454_v1, 0.0 }
  0x7d   : > { %558 = vadd.xlane.f32.xlu2 %v557_v13  ;;  %v614_v23 = vld.sshfl [vmem:[#allocation1 + $0x30] sm:$0xff pattern:$0x75316420]  ;;  %v615_v24 = vld.sshfl [vmem:[#allocation1 + $0x38] sm:$0xff pattern:$0x75316420]  ;;  %v656_v42 = vadd.f32 %v655_v37, %v654_v36 }
  0x7e   : > { %625 = vst [vmem:[#allocation1 + $0x30] ss:$2 sm:$0xff] %v592_v22  ;;  %v659_v48 = vsel %vm445_vm0, %v614_v23, 0.0  ;;  %v660_v49 = vsel %vm445_vm0, %v615_v24, 0.0  ;;  %v580_v13 = vsel %vm445_vm0, %v1459_v5, 0.0 }
  0x7f   : > { %v602_v30 = vld.sshfl [vmem:[#allocation1] sm:$0xff pattern:$0x75316420]  ;;  %v603_v31 = vld.sshfl [vmem:[#allocation1 + $0x8] sm:$0xff pattern:$0x75316420]  ;;  %573 = vadd.xlane.f32.xlu1 %v572_v18  ;;  %v661_v53 = vadd.f32 %v660_v49, %v659_v48  ;;  %v582_v16 = vadd.f32 %v581_v14, %v580_v13 }
  0x80   : > { %v644_v32 = vsel %vm445_vm0, %v602_v30, 0.0  ;;  %v645_v35 = vsel %vm445_vm0, %v603_v31, 0.0  ;;  %616 = vst [vmem:[#allocation1] ss:$2 sm:$0xff] %v589_v21  ;;  %v576_v18 = vsel %vm445_vm0, %v1456_v2, 0.0  ;;  %v694_v2 = vlaneseq }
  0x81   : > { %v646_v39 = vadd.f32 %v645_v35, %v644_v32  ;;  %v606_v40 = vld.sshfl [vmem:[#allocation1 + $0x10] sm:$0xff pattern:$0x75316420]  ;;  %v607_v41 = vld.sshfl [vmem:[#allocation1 + $0x18] sm:$0xff pattern:$0x75316420]  ;;  %v577_v19 = vadd.f32 %v576_v18, %v575_v17 }
  0x82   : > { %619 = vst [vmem:[#allocation1 + $0x10] ss:$2 sm:$0xff] %v590_v27  ;;  %v649_v43 = vsel %vm445_vm0, %v606_v40, 0.0  ;;  %v650_v44 = vsel %vm445_vm0, %v607_v41, 0.0  ;;  %v684_v1 = vld [vmem:[%s1609_s3] sm:$0xf] }
  0x83   : > { %647 = vadd.xlane.f32.xlu0 %v646_v39  ;;  %v651_v47 = vadd.f32 %v650_v44, %v649_v43  ;;  %v623_v62 = vld.sshfl [vmem:[#allocation1 + $0x20] sm:$0xff pattern:$0x75316420]  ;;  %v624_v63 = vld.sshfl [vmem:[#allocation1 + $0x28] sm:$0xff pattern:$0x75316420]  ;;  %1027 = vmatpush.msk.msra.mxu1 %vm445_vm0, %v684_v1 }
  0x84   : > { %v674_v28 = vsel %vm445_vm0, %v623_v62, 0.0  ;;  %v675_v7 = vsel %vm445_vm0, %v624_v63, 0.0  ;;  %v1520_v31 = vand.u32 127, %v694_v2  ;;  %v792_v32 = vld [vmem:[%s1611_s5] sm:$0xf] }
  0x85   : > { %563 = vadd.xlane.f32.xlu2 %v562_v38  ;;  %v676_v33 = vadd.f32 %v675_v7, %v674_v28  ;;  %v626_v34 = vld.sshfl [vmem:[#allocation1 + $0x30] sm:$0xff pattern:$0x75316420]  ;;  %v627_v10 = vld.sshfl [vmem:[#allocation1 + $0x38] sm:$0xff pattern:$0x75316420]  ;;  %1029 = vmatpush.msk.msra.mxu2 %vm445_vm0, %v792_v32 }
  0x86   : > { %v679_v11 = vsel %vm445_vm0, %v626_v34, 0.0  ;;  %v680_v12 = vsel %vm445_vm0, %v627_v10, 0.0 }
  0x87   : > { %657 = vadd.xlane.f32.xlu1 %v656_v42  ;;  %v617_v0 = vld.sshfl [vmem:[#allocation1] sm:$0xff pattern:$0x75316420]  ;;  %v618_v3 = vld.sshfl [vmem:[#allocation1 + $0x8] sm:$0xff pattern:$0x75316420]  ;;  %v681_v15 = vadd.f32 %v680_v12, %v679_v11 }
  0x88   : > { %v664_v29 = vsel %vm445_vm0, %v617_v0, 0.0  ;;  %v665_v8 = vsel %vm445_vm0, %v618_v3, 0.0  ;;  %v685_v42 = vld [vmem:[%s1610_s4] sm:$0xf] }
  0x89   : > { %v620_v51 = vld.sshfl [vmem:[#allocation1 + $0x10] sm:$0xff pattern:$0x75316420]  ;;  %v621_v52 = vld.sshfl [vmem:[#allocation1 + $0x18] sm:$0xff pattern:$0x75316420]  ;;  %v666_v9 = vadd.f32 %v665_v8, %v664_v29  ;;  %1025 = vmatpush.msk.msra.mxu0 %vm445_vm0, %v685_v42 }
  0x8a   : > { %v669_v54 = vsel %vm445_vm0, %v620_v51, 0.0  ;;  %v670_v55 = vsel %vm445_vm0, %v621_v52, 0.0 }
  0x8b   : > { %652 = vadd.xlane.f32.xlu0 %v651_v47  ;;  %v671_v58 = vadd.f32 %v670_v55, %v669_v54 }
  0x8d   : > { %568 = vadd.xlane.f32.xlu2 %v567_v50 }
  0x8f   : > { %662 = vadd.xlane.f32.xlu1 %v661_v53 }
  0x93   : > { %672 = vadd.xlane.f32.xlu0 %v671_v58 }
  0x95   : > { %479 = vadd.xlane.f32.xlu2 %v478_v61 }
  0x97   : > { %484 = vadd.xlane.f32.xlu1 %v483_v4 }
  0x9b   : > { %677 = vadd.xlane.f32.xlu0 %v676_v33 }
  0x9d   : > { %667 = vadd.xlane.f32.xlu2 %v666_v9 }
  0xa3   : > { %682 = vadd.xlane.f32.xlu0 %v681_v15 }
  0xa5   : > { %583 = vadd.xlane.f32.xlu2 %v582_v16 }
  0xab   : > { %578 = vadd.xlane.f32.xlu0 %v577_v19 }
  0xd2   : > { %v460_v20 = vpop.xlane.xlu1 %459 }
  0xd3   : > { %v754_v39 = vperm.slane %v460_v20, %v1520_v31 }
  0xd6   : > { %v450_v22 = vpop.xlane.xlu2 %449 }
  0xd7   : > { %v752_v37 = vperm.slane %v450_v22, %v1520_v31 }
  0xd8   : > { %v455_v5 = vpop.xlane.xlu0 %454 }
  0xd9   : > { %v753_v38 = vperm.slane %v455_v5, %v1520_v31 }
  0xda   : > { %v465_v21 = vpop.xlane.xlu1 %464 }
  0xdb   : > { %v760_v41 = vsel %vm704_vm1, %v753_v38, %v752_v37  ;;  %v755_v44 = vperm.slane %v465_v21, %v1520_v31 }
  0xdc   : > { %v761_v45 = vsel %vm706_vm2, %v754_v39, %v760_v41 }
  0xdd   : > { %v762_v48 = vsel %vm708_vm3, %v755_v44, %v761_v45 }
  0xe0   : > { %v475_v25 = vpop.xlane.xlu0 %474 }
  0xe1   : > { %v757_v50 = vperm.slane %v475_v25, %v1520_v31 }
  0xe2   : > { %v470_v23 = vpop.xlane.xlu1 %469 }
  0xe3   : > { %v756_v47 = vperm.slane %v470_v23, %v1520_v31 }
  0xe5   : > { %v763_v51 = vsel %vm710_vm4, %v756_v47, %v762_v48 }
  0xe6   : > { %v764_v56 = vsel %vm712_vm5, %v757_v50, %v763_v51 }
  0xe8   : > { %v1508_v24 = vpop.xlane.xlu2 %553 }
  0xe9   : > { %v697_v33 = vperm.slane %v1508_v24, %v1520_v31 }
  0xea   : > { %v1510_v6 = vpop.xlane.xlu1 %548 }
  0xeb   : > { %v696_v9 = vperm.slane %v1510_v6, %v1520_v31 }
  0xed   : > { %v705_v14 = vsel %vm704_vm1, %v697_v33, %v696_v9 }
  0xf0   : > { %v1512_v26 = vpop.xlane.xlu2 %558 }
  0xf1   : > { %v698_v12 = vperm.slane %v1512_v26, %v1520_v31 }
  0xf2   : > { %v1514_v27 = vpop.xlane.xlu1 %573 }
  0xf3   : > { %v707_v19 = vsel %vm706_vm2, %v698_v12, %v705_v14  ;;  %v701_v22 = vperm.slane %v1514_v27, %v1520_v31  ;;  %v1092_v27 = vld [vmem:[%s1612_s6] ss:$0 sm:$0xff] }
  0xf6   : > { %v648_v30 = vpop.xlane.xlu0 %647 }
  0xf7   : > { %v801_v58 = vperm.slane %v648_v30, %v1520_v31 }
  0xf8   : > { %v1525_v35 = vpop.xlane.xlu2 %563 }
  0xf9   : > { %v699_v15 = vperm.slane %v1525_v35, %v1520_v31 }
  0xfa   : > { %v658_v36 = vpop.xlane.xlu1 %657 }
  0xfb   : > { %v803_v60 = vperm.slane %v658_v36, %v1520_v31  ;;  %v709_v21 = vsel %vm708_vm3, %v699_v15, %v707_v19 }
  0xfe   : > { %v653_v40 = vpop.xlane.xlu0 %652 }
  0xff   : > { %v802_v54 = vperm.slane %v653_v40, %v1520_v31 }
 0x100   : > { %v569_v43 = vpop.xlane.xlu2 %568 }
 0x101   : > { %v809_v62 = vsel %vm704_vm1, %v802_v54, %v801_v58  ;;  %v700_v17 = vperm.slane %v569_v43, %v1520_v31  ;;  %vm893_vm1 = vcmask 7168  }
 0x102   : > { %v663_v46 = vpop.xlane.xlu1 %662  ;;  %v810_v4 = vsel %vm706_vm2, %v803_v60, %v809_v62  ;;  %vm895_vm2 = vcmask 15360  }
 0x103   : > { %v804_v63 = vperm.slane %v663_v46, %v1520_v31  ;;  %v711_v23 = vsel %vm710_vm4, %v700_v17, %v709_v21 }
 0x104   : > { %v713_v25 = vsel %vm712_vm5, %v701_v22, %v711_v23 }
 0x105   : > { %v811_v7 = vsel %vm708_vm3, %v804_v63, %v810_v4 }
 0x106   : > { %v673_v49 = vpop.xlane.xlu0 %672 }
 0x107   : > { %v806_v29 = vperm.slane %v673_v49, %v1520_v31 }
 0x108   : > { %v480_v52 = vpop.xlane.xlu2 %479 }
 0x109   : > { %v758_v53 = vperm.slane %v480_v52, %v1520_v31 }
 0x10a   : > { %v485_v55 = vpop.xlane.xlu1 %484 }
 0x10b   : > { %v759_v57 = vperm.slane %v485_v55, %v1520_v31  ;;  %v765_v59 = vsel %vm714_vm6, %v758_v53, %v764_v56 }
 0x10d   : > { %v766_v61 = vsel %vm716_vm7, %v759_v57, %v765_v59 }
 0x10e   : > { %v678_v0 = vpop.xlane.xlu0 %677  ;;  %1028 = vmatmul.msk.f32.vlgmr.msra.gmra.mxu1 %vm718_vm8, %v766_v61 }
 0x10f   : > { %v807_v10 = vperm.slane %v678_v0, %v1520_v31 }
 0x110   : > { %v668_v3 = vpop.xlane.xlu2 %667 }
 0x111   : > { %v805_v28 = vperm.slane %v668_v3, %v1520_v31 }
 0x113   : > { %v812_v8 = vsel %vm710_vm4, %v805_v28, %v811_v7 }
 0x114   : > { %v813_v34 = vsel %vm712_vm5, %v806_v29, %v812_v8 }
 0x115   : > { %v814_v16 = vsel %vm714_vm6, %v807_v10, %v813_v34 }
 0x116   : > { %v683_v11 = vpop.xlane.xlu0 %682 }
 0x117   : > { %v808_v13 = vperm.slane %v683_v11, %v1520_v31 }
 0x118   : > { %v584_v20 = vpop.xlane.xlu2 %583 }
 0x119   : > { %v815_v18 = vsel %vm716_vm7, %v808_v13, %v814_v16  ;;  %v703_v24 = vperm.slane %v584_v20, %v1520_v31 }
 0x11a   : > { %1030 = vmatmul.msk.f32.vlgmr.msra.gmra.mxu2 %vm718_vm8, %v815_v18 }
 0x11e   : > { %v579_v5 = vpop.xlane.xlu0 %578 }
 0x11f   : > { %v702_v6 = vperm.slane %v579_v5, %v1520_v31 }
 0x121   : > { %v715_v26 = vsel %vm714_vm6, %v702_v6, %v713_v25 }
 0x122   : > { %v717_v1 = vsel %vm716_vm7, %v703_v24, %v715_v26 }
 0x123   : > { %1026 = vmatmul.msk.f32.vlgmr.msra.gmra.mxu0 %vm718_vm8, %v717_v1 }
 0x18b   : > { %v789_v2 = vpop.f32.mrf.mxu1 }
 0x19d   : > { %v838_v35 = vpop.f32.mrf.mxu2 }
 0x1a0   : > { %v741_v30 = vpop.f32.mrf.mxu0 }
 0x1a1   : > { %v790_v32 = vadd.f32 %v789_v2, %v741_v30 }
 0x1a3   : > { %v841_v36 = vadd.f32 %v838_v35, %v790_v32 }
 0x1a5   : > { %v846_v37 = vadd.f32 %v1092_v27, %v841_v36 }
 0x1a7   : > { %848 = vrot.lane.b32.xlu0 %v846_v37, %s1233_s24 }
 0x219   : > { %v849_v31 = vpop.permute.xlu0 %848 }
 0x21a   : > { %v851_v38 = vsub.f32 %v846_v37, %v849_v31 }
 0x21c   : > { %v852_v39 = vmul.f32 1.442695, %v851_v38 }
 0x21e   : > { %1093 = vpow2.f32 %v852_v39 }
 0x224   : > { %v1094_v40 = vpop.eup %1093 }
 0x225   : > { %v854_v41 = vadd.f32 1.0, %v1094_v40 }
 0x227   : > { %1095 = vrcp.f32 %v854_v41  ;;  %v866_v45 = vand.u32 2147483648, %v854_v41  ;;  %v864_v47 = vand.u32 2147483647, %v854_v41  ;;  %vm860_vm10 = vweird.f32 %v854_v41 }
 0x229   : > { %v867_v49 = vor.u32 1.1754944e-38, %v866_v45  ;;  %vm865_vm12 = vcmp.eq.f32.partialorder %v864_v47, 8.507059e+37 }
 0x22d   : > { %v1096_v42 = vpop.eup %1095 }
 0x22e   : > { %v856_v43 = vmul.f32 %v1096_v42, %v854_v41  ;;  %vm861_vm9 = vweird.f32 %v1096_v42 }
 0x22f   : > { %vm862_vm11 = vmor %vm860_vm10, %vm861_vm9 }
 0x230   : > { %v857_v44 = vsub.f32 1.0, %v856_v43 }
 0x232   : > { %v858_v46 = vmul.f32 %v1096_v42, %v857_v44 }
 0x234   : > { %v859_v48 = vadd.f32 %v1096_v42, %v858_v46 }
 0x236   : > { %v863_v50 = vsel %vm862_vm11, %v1096_v42, %v859_v48 }
 0x237   : > { %v868_v51 = vsel %vm865_vm12, %v867_v49, %v863_v50 }
 0x238   : > { %v869_v52 = vmul.f32 2.0, %v868_v51 }
 0x23a   : > { %v870_v53 = vsub.f32 1.0, %v869_v52 }
 0x23c   : > { %v871_v54 = vmul.f32 1.442695, %v870_v53 }
 0x23e   : > { %1097 = vpow2.f32 %v871_v54 }
 0x244   : > { %v1098_v55 = vpop.eup %1097 }
 0x245   : > { %v873_v56 = vadd.f32 1.0, %v1098_v55 }
 0x247   : > { %1099 = vrcp.f32 %v873_v56  ;;  %v885_v60 = vand.u32 2147483648, %v873_v56  ;;  %v883_v62 = vand.u32 2147483647, %v873_v56  ;;  %vm879_vm14 = vweird.f32 %v873_v56 }
 0x249   : > { %v886_v0 = vor.u32 1.1754944e-38, %v885_v60  ;;  %vm884_vm0 = vcmp.eq.f32.partialorder %v883_v62, 8.507059e+37 }
 0x24d   : > { %v1100_v57 = vpop.eup %1099 }
 0x24e   : > { %v875_v58 = vmul.f32 %v1100_v57, %v873_v56  ;;  %vm880_vm13 = vweird.f32 %v1100_v57 }
 0x24f   : > { %vm881_vm15 = vmor %vm879_vm14, %vm880_vm13 }
 0x250   : > { %v876_v59 = vsub.f32 1.0, %v875_v58 }
 0x252   : > { %v877_v61 = vmul.f32 %v1100_v57, %v876_v59 }
 0x254   : > { %v878_v63 = vadd.f32 %v1100_v57, %v877_v61 }
 0x256   : > { %v882_v3 = vsel %vm881_vm15, %v1100_v57, %v878_v63 }
 0x257   : > { %v887_v4 = vsel %vm884_vm0, %v886_v0, %v882_v3 }
 0x258   : > { %890 = vrot.lane.b32.xlu1 %v887_v4, %s1234_s8  ;;  %v888_v28 = vsub.f32 1.0, %v887_v4 }
 0x2ca   : > { %v891_v7 = vpop.permute.xlu1 %890 }
 0x2cb   : > { %v894_v29 = vsel %vm893_vm1, %v891_v7, %v888_v28 }
 0x2cc   : > { %896 = vst.msk [vmem:[%s385_s0] sm:$0xff] %vm895_vm2, %v894_v29 }
 0x2cd PF: > { %s1622_s12 = sld [smem:[#allocation9_spill]]  ;;  %p20_p8 = scmp.ge.s32.totalorder %s1297_s29, 4  }
 0x2ce   : > { %s1623_s24 = smov %s1221_s25  ;;  %s1624_s25 = smov %s1225_s26 }
 0x2cf   : > { %s1626_s27 = smov %s1297_s29  ;;  %22 = sbr.rel (!%p20_p8) target bundleno = 8 (0x8), region = 121 }
 0x2d3   : > { %s1625_s26 = smov %s1622_s12 }
 0x2d4   :  { %916 = vsyncpa [#allocation3], 1 }
 0x2d5   :  { %918 = vsyncpa [#allocation3 + $0x1], 1 }
 0x2d6   :  { %919 = vsyncpa [#allocation5], 1 }
 0x2d7   :  { %921 = vsyncpa [#allocation5 + $0x1], 1 }

</bundles_post_ra>
